<compile_context>
chip_gen: v7x
topology: tpu7x:2x2x1
jax: 0.10.0
libtpu: 0.0.40
codegen_flags: <defaults>
</compile_context>

<pallas_src>
import functools
import math

import jax
import jax.numpy as jnp
import numpy as np
from jax import lax
from jax.experimental import pallas as pl
from jax.experimental.pallas import tpu as pltpu


def _round_up(v, m):
    return ((v + m - 1) // m) * m


def _attn_head_kernel(xq_ref, xkv_ref, wq_ref, bq_ref, wk_ref, bk_ref,
                      wv_ref, bv_ref, b_ref, c_ref, gidr_ref, gidc_ref,
                      o_ref, *, scale):
    # Projections (MXU, f32 accumulation). The 1/sqrt(dim_q) scale is folded
    # into Q: O(TQ*dp) multiplies instead of O(TQ*N) on the score tile.
    q = (jnp.dot(xq_ref[...], wq_ref[...], preferred_element_type=jnp.float32)
         + bq_ref[...]) * scale
    k = (jnp.dot(xkv_ref[...], wk_ref[...], preferred_element_type=jnp.float32)
         + bk_ref[...])
    v = (jnp.dot(xkv_ref[...], wv_ref[...], preferred_element_type=jnp.float32)
         + bv_ref[...])

    # Scores (TQ, N): contract the feature axis of Q against the feature axis
    # of K directly (no k.T materialization). bf16 operands, f32 accumulation.
    scores = lax.dot_general(
        q.astype(jnp.bfloat16), k.astype(jnp.bfloat16),
        dimension_numbers=(((1,), (1,)), ((), ())),
        preferred_element_type=jnp.float32)

    # Block-diagonal structure derived in-kernel from per-node graph ids.
    same = gidr_ref[...] == gidc_ref[...]          # (TQ,1)==(1,N) -> (TQ,N)

    # a = (QK^T * blk + b + c) * mneg, with mneg = 1 in-block, -1e6 off-block.
    bc = b_ref[...] + c_ref[...]
    logits = jnp.where(same, scores + bc, bc * jnp.float32(-1000000.0))

    # Row softmax over the full N columns, then zero off-block entries
    # (matches the reference: normalization runs over all N columns).
    m = jnp.max(logits, axis=-1, keepdims=True)
    e = jnp.exp(logits - m)
    p = e * pl.reciprocal(jnp.sum(e, axis=-1, keepdims=True), approx=True)
    p = jnp.where(same, p, jnp.float32(0.0))

    # output = softmax @ V  (bf16 operands, f32 accumulation, lane-dense store)
    o_ref[...] = jnp.dot(p.astype(jnp.bfloat16), v.astype(jnp.bfloat16),
                         preferred_element_type=jnp.float32)


def _pad_cols(a, cols):
    pad = cols - a.shape[-1]
    return jnp.pad(a, ((0, 0), (0, pad))) if pad else a


def graphormer_attention_head(x, params, b, edge_encoding, ptr=None, *,
                              tile_q=256):
    """Pallas implementation of GraphormerAttentionHead.forward.

    x:             (N, dim_in) float
    params:        dict with wq/bq/wk/bk/wv/bv (weights stored as (dim_in, dim_out))
    b:             (N, N) spatial encoding
    edge_encoding: (N, N) edge encoding
    ptr:           optional 1-D int array of graph boundary pointers
    """
    n, dim_in = x.shape
    dim_q = params["wq"].shape[1]
    dim_k = params["wk"].shape[1]

    # Pad head dims to a multiple of 128 lanes; padded columns are exactly zero
    # (zero weights/biases) so they contribute nothing and are sliced off.
    dp = _round_up(max(dim_q, dim_k, 1), 128)

    wq = _pad_cols(params["wq"].astype(jnp.float32), dp)
    wk = _pad_cols(params["wk"].astype(jnp.float32), dp)
    wv = _pad_cols(params["wv"].astype(jnp.float32), dp)
    bq = _pad_cols(params["bq"].astype(jnp.float32).reshape(1, dim_q), dp)
    bk = _pad_cols(params["bk"].astype(jnp.float32).reshape(1, dim_k), dp)
    bv = _pad_cols(params["bv"].astype(jnp.float32).reshape(1, dim_k), dp)

    # Per-node graph id (O(N) host work) replaces the three (N, N) masks.
    if ptr is None:
        gid = np.zeros((n,), np.int32)
    else:
        ptr = np.asarray(ptr)
        gid = np.repeat(np.arange(len(ptr) - 1, dtype=np.int32),
                        np.diff(ptr).astype(np.int64))
    gid_rows = jnp.asarray(gid, jnp.int32).reshape(n, 1)
    gid_cols = jnp.asarray(gid, jnp.int32).reshape(1, n)

    x = x.astype(jnp.float32)
    b = b.astype(jnp.float32)
    c = edge_encoding.astype(jnp.float32)

    # Query-row tile: full N when it fits, otherwise a multiple-of-8 tile that
    # keeps the double-buffered streamed (TQ, N) f32 tiles within ~20 MiB so
    # the kernel also fits v7x's smaller 64 MiB per-core VMEM.
    if n <= tile_q:
        tq = n
    else:
        per_row = 4 * (2 * n + dim_in + dp)          # b, c, x rows, out per query row
        max_rows = max(8, (20 << 20) // (2 * per_row))
        tq = max(8, min(tile_q, (max_rows // 8) * 8))
    grid = (pl.cdiv(n, tq),)

    # Rough VMEM budget: double-buffered streamed tiles + resident operands +
    # intermediates, clamped so it also fits v7x's 64 MiB VMEM per TensorCore.
    streamed = 4 * (tq * dim_in + 2 * tq * n + tq + tq * dp)      # per-step tiles
    resident = 4 * (n * dim_in + 3 * dim_in * dp + 3 * dp + n)    # whole-array blocks
    interm = 4 * (tq * dp + 2 * n * dp + 3 * tq * n)              # q,k,v,scores,probs
    est = 2 * streamed + 2 * resident + 2 * interm + (4 << 20)
    vmem_limit = int(min(max(est, 32 << 20), 56 << 20))

    kernel = functools.partial(_attn_head_kernel,
                               scale=1.0 / math.sqrt(float(dim_q)))

    row_tile = lambda i: (i, 0)
    whole = lambda i: (0, 0)

    out = pl.pallas_call(
        kernel,
        out_shape=jax.ShapeDtypeStruct((n, dp), jnp.float32),
        grid=grid,
        in_specs=[
            pl.BlockSpec((tq, dim_in), row_tile),   # x rows for this Q tile
            pl.BlockSpec((n, dim_in), whole),       # full x for K/V (resident)
            pl.BlockSpec((dim_in, dp), whole),      # Wq
            pl.BlockSpec((1, dp), whole),           # bq
            pl.BlockSpec((dim_in, dp), whole),      # Wk
            pl.BlockSpec((1, dp), whole),           # bk
            pl.BlockSpec((dim_in, dp), whole),      # Wv
            pl.BlockSpec((1, dp), whole),           # bv
            pl.BlockSpec((tq, n), row_tile),        # spatial encoding b
            pl.BlockSpec((tq, n), row_tile),        # edge encoding c
            pl.BlockSpec((tq, 1), row_tile),        # graph id, query rows
            pl.BlockSpec((1, n), whole),            # graph id, key columns
        ],
        out_specs=pl.BlockSpec((tq, dp), row_tile),
        compiler_params=pltpu.CompilerParams(
            dimension_semantics=("parallel",),
            vmem_limit_bytes=vmem_limit),
    )(x, x, wq, bq, wk, bk, wv, bv, b, c, gid_rows, gid_cols)

    return out[:, :dim_k]


def _reference(x, params, b, c, ptr=None):
    """Pure-JAX f32 reference mirroring the PyTorch forward."""
    n = x.shape[0]
    q = x @ params["wq"] + params["bq"]
    k = x @ params["wk"] + params["bk"]
    v = x @ params["wv"] + params["bv"]
    dim_q = q.shape[-1]
    if ptr is None:
        a = q @ k.T / math.sqrt(dim_q)
        mneg = jnp.ones((n, n), jnp.float32)
        mzero = jnp.ones((n, n), jnp.float32)
    else:
        ptr = np.asarray(ptr)
        blk = np.zeros((n, n), np.float32)
        for i in range(len(ptr) - 1):
            blk[ptr[i]:ptr[i + 1], ptr[i]:ptr[i + 1]] = 1.0
        a = (q @ k.T / math.sqrt(dim_q)) * jnp.asarray(blk)
        mneg = jnp.asarray(blk + (1.0 - blk) * (-1000000.0))
        mzero = jnp.asarray(blk)
    a = (a + b + c) * mneg
    s = jax.nn.softmax(a, axis=-1) * mzero
    return s @ v


if __name__ == "__main__":
    N, DIM_IN, DIM_Q, DIM_K = 24, 32, 16, 16
    TILE_Q = 8                      # 3 row tiles -> exercises the grid/pipeline

    key = jax.random.PRNGKey(0)
    ks = jax.random.split(key, 9)

    def init_w(k, fan_in, fan_out):
        bound = 1.0 / math.sqrt(fan_in)
        return jax.random.uniform(k, (fan_in, fan_out), jnp.float32, -bound, bound)

    params = {
        "wq": init_w(ks[0], DIM_IN, DIM_Q),
        "bq": jax.random.uniform(ks[1], (DIM_Q,), jnp.float32, -0.1, 0.1),
        "wk": init_w(ks[2], DIM_IN, DIM_K),
        "bk": jax.random.uniform(ks[3], (DIM_K,), jnp.float32, -0.1, 0.1),
        "wv": init_w(ks[4], DIM_IN, DIM_K),
        "bv": jax.random.uniform(ks[5], (DIM_K,), jnp.float32, -0.1, 0.1),
    }

    x = jax.random.normal(ks[6], (N, DIM_IN), jnp.float32)
    # Non-negative encodings keep the module's multiplicative -1e6 masking in
    # its intended regime (see numerical note at the top of this file).
    b_enc = jax.random.uniform(ks[7], (N, N), jnp.float32, 0.0, 1.0)
    c_enc = jax.random.uniform(ks[8], (N, N), jnp.float32, 0.0, 1.0)

    # bf16 MXU operands + approx reciprocal => loosened comparison tolerance.
    TOL = dict(rtol=2e-2, atol=2e-2)

    # Case 1: ptr=None (single graph, no batch masking).
    out1 = jax.block_until_ready(
        graphormer_attention_head(x, params, b_enc, c_enc, ptr=None,
                                  tile_q=TILE_Q))
    ref1 = _reference(x, params, b_enc, c_enc, ptr=None)
    np.testing.assert_allclose(np.asarray(out1), np.asarray(ref1), **TOL)

    # Case 2: batched graphs via ptr (block-diagonal masking across row tiles).
    ptr = np.array([0, 5, 13, 24], dtype=np.int32)
    out2 = jax.block_until_ready(
        graphormer_attention_head(x, params, b_enc, c_enc, ptr=ptr,
                                  tile_q=TILE_Q))
    ref2 = _reference(x, params, b_enc, c_enc, ptr=ptr)
    np.testing.assert_allclose(np.asarray(out2), np.asarray(ref2), **TOL)

    print("KERNEL_OK")
</pallas_src>

<mosaic_0001>
module attributes {stable_mosaic.version = 11 : i64} {
  func.func @_attn_head_kernel(%arg0: i32, %arg1: memref<8x32xf32, #tpu.memory_space<vmem>>, %arg2: memref<24x32xf32, #tpu.memory_space<vmem>>, %arg3: memref<32x128xf32, #tpu.memory_space<vmem>>, %arg4: memref<1x128xf32, #tpu.memory_space<vmem>>, %arg5: memref<32x128xf32, #tpu.memory_space<vmem>>, %arg6: memref<1x128xf32, #tpu.memory_space<vmem>>, %arg7: memref<32x128xf32, #tpu.memory_space<vmem>>, %arg8: memref<1x128xf32, #tpu.memory_space<vmem>>, %arg9: memref<8x24xf32, #tpu.memory_space<vmem>>, %arg10: memref<8x24xf32, #tpu.memory_space<vmem>>, %arg11: memref<8x1xi32, #tpu.memory_space<vmem>>, %arg12: memref<1x24xi32, #tpu.memory_space<vmem>>, %arg13: memref<8x128xf32, #tpu.memory_space<vmem>>) attributes {dimension_semantics = [#tpu.dimension_semantics<parallel>], iteration_bounds = array<i64: 3>, scalar_prefetch = 0 : i64, scratch_operands = 0 : i64, tpu.core_type = #tpu.core_type<tc>, window_params = [{transform_indices = @transform_0, window_bounds = array<i64: 8, 32>}, {pipeline_mode = #tpu.pipeline_mode<synchronous>, transform_indices = @transform_1, window_bounds = array<i64: 24, 32>}, {pipeline_mode = #tpu.pipeline_mode<synchronous>, transform_indices = @transform_2, window_bounds = array<i64: 32, 128>}, {pipeline_mode = #tpu.pipeline_mode<synchronous>, transform_indices = @transform_3, window_bounds = array<i64: 1, 128>}, {pipeline_mode = #tpu.pipeline_mode<synchronous>, transform_indices = @transform_4, window_bounds = array<i64: 32, 128>}, {pipeline_mode = #tpu.pipeline_mode<synchronous>, transform_indices = @transform_5, window_bounds = array<i64: 1, 128>}, {pipeline_mode = #tpu.pipeline_mode<synchronous>, transform_indices = @transform_6, window_bounds = array<i64: 32, 128>}, {pipeline_mode = #tpu.pipeline_mode<synchronous>, transform_indices = @transform_7, window_bounds = array<i64: 1, 128>}, {transform_indices = @transform_8, window_bounds = array<i64: 8, 24>}, {transform_indices = @transform_9, window_bounds = array<i64: 8, 24>}, {transform_indices = @transform_10, window_bounds = array<i64: 8, 1>}, {pipeline_mode = #tpu.pipeline_mode<synchronous>, transform_indices = @transform_11, window_bounds = array<i64: 1, 24>}, {transform_indices = @transform_12, window_bounds = array<i64: 8, 128>}]} {
    %c0 = arith.constant 0 : index
    %c0_0 = arith.constant 0 : index
    %0 = vector.load %arg1[%c0, %c0_0] : memref<8x32xf32, #tpu.memory_space<vmem>>, vector<8x32xf32>
    %c0_1 = arith.constant 0 : index
    %c0_2 = arith.constant 0 : index
    %1 = vector.load %arg3[%c0_1, %c0_2] : memref<32x128xf32, #tpu.memory_space<vmem>>, vector<32x128xf32>
    %cst = arith.constant dense<0.000000e+00> : vector<8x128xf32>
    %2 = tpu.matmul %0, %1, %cst {dimension_numbers = #tpu.dot_dimension_numbers<[1], [0], [0], [1], [0, 0, 1, 1], [], []>} : vector<8x32xf32>, vector<32x128xf32>, vector<8x128xf32> -> vector<8x128xf32>
    %c0_3 = arith.constant 0 : index
    %c0_4 = arith.constant 0 : index
    %3 = vector.load %arg4[%c0_3, %c0_4] : memref<1x128xf32, #tpu.memory_space<vmem>>, vector<1x128xf32>
    %4 = vector.broadcast %3 : vector<1x128xf32> to vector<8x128xf32>
    %5 = arith.addf %2, %4 : vector<8x128xf32>
    %cst_5 = arith.constant 2.500000e-01 : f32
    %6 = vector.broadcast %cst_5 : f32 to vector<8x128xf32>
    %7 = arith.mulf %5, %6 : vector<8x128xf32>
    %c0_6 = arith.constant 0 : index
    %c0_7 = arith.constant 0 : index
    %8 = vector.load %arg2[%c0_6, %c0_7] : memref<24x32xf32, #tpu.memory_space<vmem>>, vector<24x32xf32>
    %c0_8 = arith.constant 0 : index
    %c0_9 = arith.constant 0 : index
    %9 = vector.load %arg5[%c0_8, %c0_9] : memref<32x128xf32, #tpu.memory_space<vmem>>, vector<32x128xf32>
    %cst_10 = arith.constant dense<0.000000e+00> : vector<24x128xf32>
    %10 = tpu.matmul %8, %9, %cst_10 {dimension_numbers = #tpu.dot_dimension_numbers<[1], [0], [0], [1], [0, 0, 1, 1], [], []>} : vector<24x32xf32>, vector<32x128xf32>, vector<24x128xf32> -> vector<24x128xf32>
    %c0_11 = arith.constant 0 : index
    %c0_12 = arith.constant 0 : index
    %11 = vector.load %arg6[%c0_11, %c0_12] : memref<1x128xf32, #tpu.memory_space<vmem>>, vector<1x128xf32>
    %12 = vector.broadcast %11 : vector<1x128xf32> to vector<24x128xf32>
    %13 = arith.addf %10, %12 : vector<24x128xf32>
    %c0_13 = arith.constant 0 : index
    %c0_14 = arith.constant 0 : index
    %14 = vector.load %arg2[%c0_13, %c0_14] : memref<24x32xf32, #tpu.memory_space<vmem>>, vector<24x32xf32>
    %c0_15 = arith.constant 0 : index
    %c0_16 = arith.constant 0 : index
    %15 = vector.load %arg7[%c0_15, %c0_16] : memref<32x128xf32, #tpu.memory_space<vmem>>, vector<32x128xf32>
    %cst_17 = arith.constant dense<0.000000e+00> : vector<24x128xf32>
    %16 = tpu.matmul %14, %15, %cst_17 {dimension_numbers = #tpu.dot_dimension_numbers<[1], [0], [0], [1], [0, 0, 1, 1], [], []>} : vector<24x32xf32>, vector<32x128xf32>, vector<24x128xf32> -> vector<24x128xf32>
    %c0_18 = arith.constant 0 : index
    %c0_19 = arith.constant 0 : index
    %17 = vector.load %arg8[%c0_18, %c0_19] : memref<1x128xf32, #tpu.memory_space<vmem>>, vector<1x128xf32>
    %18 = vector.broadcast %17 : vector<1x128xf32> to vector<24x128xf32>
    %19 = arith.addf %16, %18 : vector<24x128xf32>
    %20 = arith.truncf %7 : vector<8x128xf32> to vector<8x128xbf16>
    %21 = arith.truncf %13 : vector<24x128xf32> to vector<24x128xbf16>
    %cst_20 = arith.constant dense<0.000000e+00> : vector<8x24xf32>
    %22 = tpu.matmul %20, %21, %cst_20 {dimension_numbers = #tpu.dot_dimension_numbers<[1], [1], [0], [0], [0, 0, 1, 0], [], []>} : vector<8x128xbf16>, vector<24x128xbf16>, vector<8x24xf32> -> vector<8x24xf32>
    %c0_21 = arith.constant 0 : index
    %c0_22 = arith.constant 0 : index
    %23 = vector.load %arg11[%c0_21, %c0_22] : memref<8x1xi32, #tpu.memory_space<vmem>>, vector<8x1xi32>
    %c0_23 = arith.constant 0 : index
    %c0_24 = arith.constant 0 : index
    %24 = vector.load %arg12[%c0_23, %c0_24] : memref<1x24xi32, #tpu.memory_space<vmem>>, vector<1x24xi32>
    %25 = vector.broadcast %23 : vector<8x1xi32> to vector<8x24xi32>
    %26 = vector.broadcast %24 : vector<1x24xi32> to vector<8x24xi32>
    %27 = arith.cmpi eq, %25, %26 : vector<8x24xi32>
    %c0_25 = arith.constant 0 : index
    %c0_26 = arith.constant 0 : index
    %28 = vector.load %arg9[%c0_25, %c0_26] : memref<8x24xf32, #tpu.memory_space<vmem>>, vector<8x24xf32>
    %c0_27 = arith.constant 0 : index
    %c0_28 = arith.constant 0 : index
    %29 = vector.load %arg10[%c0_27, %c0_28] : memref<8x24xf32, #tpu.memory_space<vmem>>, vector<8x24xf32>
    %30 = arith.addf %28, %29 : vector<8x24xf32>
    %31 = arith.addf %22, %30 : vector<8x24xf32>
    %cst_29 = arith.constant -1.000000e+06 : f32
    %32 = vector.broadcast %cst_29 : f32 to vector<8x24xf32>
    %33 = arith.mulf %30, %32 : vector<8x24xf32>
    %34 = arith.select %27, %31, %33 : vector<8x24xi1>, vector<8x24xf32>
    %cst_30 = arith.constant dense<0xFF800000> : vector<8xf32>
    %35 = vector.multi_reduction <maximumf>, %34, %cst_30 [1] : vector<8x24xf32> to vector<8xf32>
    %36 = vector.shape_cast %35 : vector<8xf32> to vector<8x1xf32>
    %37 = vector.broadcast %36 : vector<8x1xf32> to vector<8x24xf32>
    %38 = arith.subf %34, %37 : vector<8x24xf32>
    %39 = math.exp %38 : vector<8x24xf32>
    %cst_31 = arith.constant dense<0.000000e+00> : vector<8xf32>
    %40 = vector.multi_reduction <add>, %39, %cst_31 [1] : vector<8x24xf32> to vector<8xf32>
    %41 = vector.shape_cast %40 : vector<8xf32> to vector<8x1xf32>
    %42 = tpu.reciprocal %41 {approx = true} : vector<8x1xf32> -> vector<8x1xf32>
    %43 = vector.broadcast %42 : vector<8x1xf32> to vector<8x24xf32>
    %44 = arith.mulf %39, %43 : vector<8x24xf32>
    %cst_32 = arith.constant 0.000000e+00 : f32
    %45 = vector.broadcast %cst_32 : f32 to vector<8x24xf32>
    %46 = arith.select %27, %44, %45 : vector<8x24xi1>, vector<8x24xf32>
    %47 = arith.truncf %46 : vector<8x24xf32> to vector<8x24xbf16>
    %48 = arith.truncf %19 : vector<24x128xf32> to vector<24x128xbf16>
    %cst_33 = arith.constant dense<0.000000e+00> : vector<8x128xf32>
    %49 = tpu.matmul %47, %48, %cst_33 {dimension_numbers = #tpu.dot_dimension_numbers<[1], [0], [0], [1], [0, 0, 1, 1], [], []>} : vector<8x24xbf16>, vector<24x128xbf16>, vector<8x128xf32> -> vector<8x128xf32>
    %c0_34 = arith.constant 0 : index
    %c0_35 = arith.constant 0 : index
    %50 = vector.load %arg13[%c0_34, %c0_35] : memref<8x128xf32, #tpu.memory_space<vmem>>, vector<8x128xf32>
    tpu.vector_store %arg13[%c0_34, %c0_35], %49 {strides = array<i32>} : memref<8x128xf32, #tpu.memory_space<vmem>>, vector<8x128xf32>,
    return
  }
  func.func @transform_0(%arg0: i32) -> (i32, i32) {
    %c0_i32 = arith.constant 0 : i32
    %c0_i32_0 = arith.constant 0 : i32
    return %arg0, %c0_i32 : i32, i32
  }
  func.func @transform_1(%arg0: i32) -> (i32, i32) {
    %c0_i32 = arith.constant 0 : i32
    %c0_i32_0 = arith.constant 0 : i32
    %c0_i32_1 = arith.constant 0 : i32
    return %c0_i32, %c0_i32_0 : i32, i32
  }
  func.func @transform_2(%arg0: i32) -> (i32, i32) {
    %c0_i32 = arith.constant 0 : i32
    %c0_i32_0 = arith.constant 0 : i32
    %c0_i32_1 = arith.constant 0 : i32
    return %c0_i32, %c0_i32_0 : i32, i32
  }
  func.func @transform_3(%arg0: i32) -> (i32, i32) {
    %c0_i32 = arith.constant 0 : i32
    %c0_i32_0 = arith.constant 0 : i32
    %c0_i32_1 = arith.constant 0 : i32
    return %c0_i32, %c0_i32_0 : i32, i32
  }
  func.func @transform_4(%arg0: i32) -> (i32, i32) {
    %c0_i32 = arith.constant 0 : i32
    %c0_i32_0 = arith.constant 0 : i32
    %c0_i32_1 = arith.constant 0 : i32
    return %c0_i32, %c0_i32_0 : i32, i32
  }
  func.func @transform_5(%arg0: i32) -> (i32, i32) {
    %c0_i32 = arith.constant 0 : i32
    %c0_i32_0 = arith.constant 0 : i32
    %c0_i32_1 = arith.constant 0 : i32
    return %c0_i32, %c0_i32_0 : i32, i32
  }
  func.func @transform_6(%arg0: i32) -> (i32, i32) {
    %c0_i32 = arith.constant 0 : i32
    %c0_i32_0 = arith.constant 0 : i32
    %c0_i32_1 = arith.constant 0 : i32
    return %c0_i32, %c0_i32_0 : i32, i32
  }
  func.func @transform_7(%arg0: i32) -> (i32, i32) {
    %c0_i32 = arith.constant 0 : i32
    %c0_i32_0 = arith.constant 0 : i32
    %c0_i32_1 = arith.constant 0 : i32
    return %c0_i32, %c0_i32_0 : i32, i32
  }
  func.func @transform_8(%arg0: i32) -> (i32, i32) {
    %c0_i32 = arith.constant 0 : i32
    %c0_i32_0 = arith.constant 0 : i32
    return %arg0, %c0_i32 : i32, i32
  }
  func.func @transform_9(%arg0: i32) -> (i32, i32) {
    %c0_i32 = arith.constant 0 : i32
    %c0_i32_0 = arith.constant 0 : i32
    return %arg0, %c0_i32 : i32, i32
  }
  func.func @transform_10(%arg0: i32) -> (i32, i32) {
    %c0_i32 = arith.constant 0 : i32
    %c0_i32_0 = arith.constant 0 : i32
    return %arg0, %c0_i32 : i32, i32
  }
  func.func @transform_11(%arg0: i32) -> (i32, i32) {
    %c0_i32 = arith.constant 0 : i32
    %c0_i32_0 = arith.constant 0 : i32
    %c0_i32_1 = arith.constant 0 : i32
    return %c0_i32, %c0_i32_0 : i32, i32
  }
  func.func @transform_12(%arg0: i32) -> (i32, i32) {
    %c0_i32 = arith.constant 0 : i32
    %c0_i32_0 = arith.constant 0 : i32
    return %arg0, %c0_i32 : i32, i32
  }
}

</mosaic_0001>

<bundles_post_ra>
// kernel: tpu_custom_call.1
= control target key start
LH: loop header
LB: loop body
LE: loop exit
PB: predicated region body
PF: predicated region fallthrough
CT: control target
= control target key end

     0   :  { %s2004_s0 = inlined_call_operand.hbm [shape: f32[24,32], index: 0, kind: input, shape index: {}]   ;;  %s2005_s1 = inlined_call_operand.hbm [shape: f32[24,32], index: 1, kind: input, shape index: {}]   ;;  %s2006_s2 = inlined_call_operand.vmem [shape: f32[32,128], index: 2, kind: input, shape index: {}]   ;;  %s2007_s3 = inlined_call_operand.vmem [shape: f32[1,128], index: 3, kind: input, shape index: {}]   ;;  %s2008_s4 = inlined_call_operand.hbm [shape: f32[32,128], index: 4, kind: input, shape index: {}]   ;;  %s2009_s5 = inlined_call_operand.vmem [shape: f32[1,128], index: 5, kind: input, shape index: {}]   ;;  %s2010_s6 = inlined_call_operand.hbm [shape: f32[32,128], index: 6, kind: input, shape index: {}]   ;;  %s2011_s7 = inlined_call_operand.vmem [shape: f32[1,128], index: 7, kind: input, shape index: {}]   ;;  %s2012_s8 = inlined_call_operand.hbm [shape: f32[24,24], index: 8, kind: input, shape index: {}]   ;;  %s2013_s9 = inlined_call_operand.vmem [shape: f32[24,24], index: 9, kind: input, shape index: {}]   ;;  %s2014_s10 = inlined_call_operand.vmem [shape: s32[24,1], index: 10, kind: input, shape index: {}]   ;;  %s2015_s11 = inlined_call_operand.vmem [shape: s32[1,24], index: 11, kind: input, shape index: {}]   ;;  %s2016_s12 = inlined_call_operand.hbm [shape: f32[24,128], index: 12, kind: output, shape index: {}]  }
   0x1   :  { %2039 = sst [smem:[#allocation24_spill]] %s2004_s0 }
   0x2   :  { %2040 = sst [smem:[#allocation25_spill]] %s2005_s1 }
   0x3   :  { %2041 = sst [smem:[#allocation26_spill]] %s2007_s3 }
   0x4   :  { %2042 = sst [smem:[#allocation27_spill]] %s2011_s7 }
   0x5   :  { %2043 = sst [smem:[#allocation28_spill]] %s2013_s9 }
   0x6   :  { %2044 = sst [smem:[#allocation29_spill]] %s2015_s11 }
   0x7   :  { %2045 = sst [smem:[#allocation30_spill]] %s2016_s12 }
   0x8   :  { %17 = vsyncpa [#allocation3], 0 }
   0x9   :  { %19 = vsyncpa [#allocation3 + $0x1], 0 }
   0xa   :  { %20 = vsyncpa [#allocation6], 0 }
   0xb   :  { %21 = vsyncpa [#allocation9], 0 }
   0xc   :  { %22 = vsyncpa [#allocation4], 0 }
   0xd   :  { %24 = vsyncpa [#allocation4 + $0x1], 0  ;;  %s1635_s21 = smov 0   ;;  %s1637_s22 = smov 0  }
   0xe   :  { %s1639_s23 = smov 0   ;;  %s1641_s24 = smov 0  }
   0xf LB: > { %2046 = sst [smem:[#allocation17_spill]] %s1544_s21  ;;  %s1656_s25 = sadd.s32 4294967295, %s1556_s24   ;;  %s1556_s24 = sphi %s1641_s24, %s2086_s24   ;;  %s1552_s23 = sphi %s1639_s23, %s2088_s23   ;;  %s1548_s22 = sphi %s1637_s22, %s2090_s22   ;;  %s1544_s21 = sphi %s1635_s21, %s2089_s21  }
  0x10   : > { %2047 = sst [smem:[#allocation18_spill]] %s1552_s23  ;;  %s1102_s26 = sadd.s32 4294967294, %s1556_s24  }
  0x11   : > { %2048 = sst [smem:[#allocation19_spill]] %s1556_s24  ;;  %p50_p0 = scmp.ne.s32.totalorder %s1548_s22, %s1544_s21 }
  0x12   : > { %p2020_p1 = scmp.eq.s32.totalorder %s1656_s25, 0  ;;  %p326_p3 = scmp.eq.s32.totalorder %s1102_s26, 2 }
  0x13   : > { %p1103_p5 = scmp.ge.s32.totalorder %s1556_s24, 1  ;;  %p333_p7 = scmp.lt.s32.totalorder %s1556_s24, 4 }
  0x14   : > { %p1665_p4 = por %p2020_p1, %p50_p0  ;;  %p1670_p6 = por %p326_p3, %p50_p0 }
  0x15   : > { %p1675_p8 = pnand %p1103_p5, %p333_p7  ;;  %s1558_s30 = smov [#allocation5]  }
  0x16   : > { %s2049_s27 = scalar_select %p1665_p4, 1, 0 }
  0x17   : > { %s2050_s28 = scalar_select %p1670_p6, 1, 0 }
  0x18   : > { %s2052_s29 = scalar_select %p1675_p8, 1, 0 }
  0x19   : > { %2051 = sst [smem:[#allocation20_spill]] %s2050_s28  ;;  %s345_s13 = sshll.u32 %s1558_s30, 4  ;;  %s346_s13 = int_to_ptr.vmem [resolvable:$true] %s345_s13 }
  0x1a   : > { %p1259_p9 = pneg %p1675_p8  ;;  %s1688_s15 = sadd.s32 1, %s1556_s24  }
  0x1b   : > { %2054 = sst [smem:[#allocation21_spill]] %s1688_s15  ;;  %s37_s16 = sadd.s32 1, %s1552_s23 }
  0x1c   : > { %p1683_p10 = pnand %p1259_p9, %p2020_p1  ;;  %s34_s17 = ssub.s32 %s1556_s24, %s1688_s15 }
  0x1d   : > { %s2055_s1 = sld [smem:[#allocation25_spill]] }
  0x1e   : > { %s2053_s14 = scalar_select %p1683_p10, 1, 0 }
  0x1f   : > { %p1701_p12 = pneg %p1683_p10 }
  0x23   : > { %s1334_s20 = scalar_lea.hbm %s2055_s1, 384 }
  0x24   : > { %p1335_p11 = scmp.ne.s32.totalorder %s2055_s1, %s1334_s20  ;;  %p1341_p3 = scmp.lt.u32.totalorder %s1334_s20, %s2055_s1 }
  0x26   : > { %p1337_p13 = pnand %p1701_p12, %p1335_p11 }
  0x28   : > { %p1338_p0 = pneg %p1337_p13 }
  0x2a   : > { %p1343_p5 = pnand %p1341_p3, %p1338_p0 }
  0x2c   : > { %1346 = shalt.err (!%p1343_p5)
}
  0x2d   : > { %s1347_s18 = scalar_lea.vmem %s346_s13, 384  ;;  %p1355_p2 = scmp.lt.s32.totalorder %s346_s13, %s346_s13 }
  0x2e   : > { %p1348_p7 = scmp.ne.s32.totalorder %s346_s13, %s1347_s18  ;;  %p1356_p6 = scmp.lt.s32.totalorder %s1347_s18, %s1347_s18 }
  0x30   : > { %p1350_p9 = pnand %p1348_p7, %p1701_p12  ;;  %p1357_p4 = por %p1356_p6, %p1355_p2 }
  0x32   : > { %p1351_p1 = pneg %p1350_p9 }
  0x34   : > { %p1358_p8 = pnand %p1357_p4, %p1351_p1 }
  0x36   : > { %1361 = shalt.err (!%p1358_p8)
}
  0x37   : > { %s2025_s19 = smov 128   ;;  %s2027_s12 = smov 8  }
  0x38   : > { %1262 = dma.hbm_to_vmem [thread:$0]  (!%p1683_p10), %s2055_s1, 384, %s346_s13, [#allocation6], %s2025_s19, %s2025_s19, %s2027_s12  }
  0x39   : > { %p35_p1 = scmp.eq.s32.totalorder %s34_s17, 0  ;;  %p44_p2 = scmp.ne.s32.totalorder %s1552_s23, %s1548_s22 }
  0x3a   : > { %p45_p4 = scmp.eq.s32.totalorder %s1556_s24, 0  ;;  %p1283_p6 = scmp.lt.s32.totalorder %s1556_s24, 3 }
  0x3b   : > { %s1725_s26 = scalar_select %p35_p1, %s1552_s23, %s37_s16  }
  0x3c   : > { %p46_p8 = por %p45_p4, %p44_p2  ;;  %p2058_p11 = scmp.eq.s32.totalorder %s1656_s25, 2 }
  0x3d   : > { %2057 = sst [smem:[#allocation22_spill]] %s1725_s26  ;;  %s400_s18 = sand.u32 1, %s1556_s24  }
  0x3e   : > { %p1729_p13 = por %p2058_p11, %p44_p2  ;;  %s402_s15 = sand.u32 1, %s1552_s23  }
  0x3f   : > { %s1735_s7 = sshll.u32 %s402_s15, 3  ;;  %s1109_s11 = sshll.u32 %s1556_s24, 7 }
  0x40   : > { %s2059_s30 = scalar_select %p1729_p13, 1, 0 }
  0x41   : > { %s2061_s0 = sld [smem:[#allocation24_spill]]  ;;  %s404_s16 = scalar_lea.vmem [#allocation2], %s1735_s7 }
  0x42   : > { %2060 = sst [smem:[#allocation23_spill]] %s2059_s30  ;;  %s411_s20 = sshll.u32 %s404_s16, 4  ;;  %s1744_s20 = int_to_ptr.vmem [resolvable:$true] %s411_s20 }
  0x43   : > { %p1746_p0 = pnand %p1283_p6, %p46_p8  ;;  %s1753_s21 = scalar_lea.hbm %s2012_s8, %s1109_s11 }
  0x44   : > { %s1755_s13 = scalar_lea.sflag [#allocation3], %s400_s18 }
  0x45   : > { %s2062_s19 = scalar_select %p1746_p0, 1, 0 }
  0x46   : > { %p2036_p5 = pneg %p1746_p0 }
  0x47   : > { %s1741_s17 = scalar_lea.hbm %s2061_s0, %s1109_s11  ;;  %s1367_s23 = scalar_lea.hbm %s2061_s0, 384 }
  0x48   : > { %s1362_s1 = scalar_lea.hbm %s1741_s17, 128  ;;  %p1368_p1 = scmp.lt.u32.totalorder %s1741_s17, %s2061_s0 }
  0x49   : > { %p1363_p3 = scmp.ne.s32.totalorder %s1741_s17, %s1362_s1  ;;  %p1369_p2 = scmp.lt.u32.totalorder %s1367_s23, %s1362_s1 }
  0x4a   : > { %p1371_p6 = scmp.lt.u32.totalorder %s1362_s1, %s1741_s17 }
  0x4b   : > { %p1365_p7 = pnand %p2036_p5, %p1363_p3  ;;  %p1370_p4 = por %p1369_p2, %p1368_p1 }
  0x4d   : > { %p1366_p9 = pneg %p1365_p7  ;;  %p1372_p8 = por %p1371_p6, %p1370_p4 }
  0x4f   : > { %p1373_p11 = pnand %p1372_p8, %p1366_p9 }
  0x51   : > { %1376 = shalt.err (!%p1373_p11)
}
  0x52   : > { %s1377_s11 = scalar_lea.vmem %s1744_s20, 128  ;;  %s1561_s26 = smov [#allocation2]  }
  0x53   : > { %p1378_p3 = scmp.ne.s32.totalorder %s1744_s20, %s1377_s11  ;;  %s1382_s18 = sshll.u32 %s1561_s26, 4  ;;  %s1383_s18 = int_to_ptr.vmem [resolvable:$false] %s1382_s18 }
  0x54   : > { %s1384_s24 = scalar_lea.vmem %s1383_s18, 256  ;;  %p1385_p10 = scmp.lt.s32.totalorder %s1744_s20, %s1383_s18 }
  0x55   : > { %p1380_p7 = pnand %p1378_p3, %p2036_p5  ;;  %p1386_p1 = scmp.lt.s32.totalorder %s1384_s24, %s1377_s11 }
  0x57   : > { %p1381_p13 = pneg %p1380_p7  ;;  %p1387_p2 = por %p1386_p1, %p1385_p10 }
  0x59   : > { %p1388_p4 = pnand %p1387_p2, %p1381_p13 }
  0x5b   : > { %1391 = shalt.err (!%p1388_p4)
}
  0x5c   : > { %1272 = dma.hbm_to_vmem [thread:$0]  (!%p1746_p0), %s1741_s17, 128, %s1744_s20, %s1755_s13  }
  0x5d   : > { %s1562_s1 = smov [#allocation7]   ;;  %s1563_s15 = smov [#allocation8]  }
  0x5e   : > { %s364_s23 = sshll.u32 %s1562_s1, 4  ;;  %s380_s16 = sshll.u32 %s1563_s15, 4  ;;  %s365_s23 = int_to_ptr.vmem [resolvable:$true] %s364_s23  ;;  %s381_s16 = int_to_ptr.vmem [resolvable:$true] %s380_s16 }
  0x5f   : > { %s1392_s18 = scalar_lea.hbm %s2008_s4, 512 }
  0x60   : > { %p1393_p10 = scmp.ne.s32.totalorder %s2008_s4, %s1392_s18  ;;  %p1399_p6 = scmp.lt.u32.totalorder %s1392_s18, %s2008_s4 }
  0x62   : > { %p1395_p13 = pnand %p1393_p10, %p1701_p12 }
  0x64   : > { %p1396_p9 = pneg %p1395_p13 }
  0x66   : > { %p1401_p8 = pnand %p1399_p6, %p1396_p9 }
  0x68   : > { %1404 = shalt.err (!%p1401_p8)
}
  0x69   : > { %s1405_s17 = scalar_lea.vmem %s365_s23, 512  ;;  %p1413_p1 = scmp.lt.s32.totalorder %s365_s23, %s365_s23 }
  0x6a   : > { %p1406_p11 = scmp.ne.s32.totalorder %s365_s23, %s1405_s17  ;;  %p1414_p2 = scmp.lt.s32.totalorder %s1405_s17, %s1405_s17 }
  0x6c   : > { %p1408_p3 = pnand %p1406_p11, %p1701_p12  ;;  %p1415_p4 = por %p1414_p2, %p1413_p1 }
  0x6e   : > { %p1409_p7 = pneg %p1408_p3 }
  0x70   : > { %p1416_p5 = pnand %p1415_p4, %p1409_p7 }
  0x72   : > { %1419 = shalt.err (!%p1416_p5)
}
  0x73   : > { %p2063_p10 = scmp.ne.s32.totalorder %s2053_s14, 0  ;;  %s2064_s20 = smov 8  }
  0x74   : > { %s2065_s1 = smov 128   ;;  %s422_s15 = scalar_lea.vmem [#allocation10], %s1735_s7 }
  0x75   : > { %1265 = dma.hbm_to_vmem [thread:$0]  (!%p2063_p10), %s2008_s4, 512, %s365_s23, [#allocation6], %s2065_s1, %s2065_s1, %s2064_s20  }
  0x76   : > { %s429_s12 = sshll.u32 %s422_s15, 4  ;;  %s1420_s11 = scalar_lea.hbm %s2010_s6, 512  ;;  %s430_s12 = int_to_ptr.vmem [resolvable:$true] %s429_s12 }
  0x77   : > { %p1421_p5 = scmp.ne.s32.totalorder %s2010_s6, %s1420_s11  ;;  %p1427_p6 = scmp.lt.u32.totalorder %s1420_s11, %s2010_s6 }
  0x79   : > { %p1423_p13 = pnand %p1421_p5, %p1701_p12 }
  0x7b   : > { %p1424_p9 = pneg %p1423_p13 }
  0x7d   : > { %p1429_p8 = pnand %p1427_p6, %p1424_p9 }
  0x7f   : > { %1432 = shalt.err (!%p1429_p8)
}
  0x80   : > { %s1433_s23 = scalar_lea.vmem %s381_s16, 512  ;;  %p1441_p1 = scmp.lt.s32.totalorder %s381_s16, %s381_s16 }
  0x81   : > { %p1434_p11 = scmp.ne.s32.totalorder %s381_s16, %s1433_s23  ;;  %p1442_p2 = scmp.lt.s32.totalorder %s1433_s23, %s1433_s23 }
  0x83   : > { %p1436_p3 = pnand %p1434_p11, %p1701_p12  ;;  %p1443_p4 = por %p1442_p2, %p1441_p1 }
  0x85   : > { %p1437_p7 = pneg %p1436_p3 }
  0x87   : > { %p1444_p0 = pnand %p1443_p4, %p1437_p7 }
  0x89   : > { %1447 = shalt.err (!%p1444_p0)
}
  0x8a   : > { %1268 = dma.hbm_to_vmem [thread:$0]  (!%p2063_p10), %s2010_s6, 512, %s381_s16, [#allocation9], %s2065_s1, %s2065_s1, %s2064_s20  }
  0x8b   : > { %s1448_s9 = scalar_lea.hbm %s1753_s21, 128  ;;  %p2066_p5 = scmp.ne.s32.totalorder %s2062_s19, 0 }
  0x8c   : > { %p1449_p12 = scmp.ne.s32.totalorder %s1753_s21, %s1448_s9  ;;  %s1453_s0 = scalar_lea.hbm %s2012_s8, 384 }
  0x8d   : > { %p2067_p13 = pneg %p2066_p5  ;;  %p1454_p6 = scmp.lt.u32.totalorder %s1753_s21, %s2012_s8 }
  0x8e   : > { %p1455_p8 = scmp.lt.u32.totalorder %s1453_s0, %s1448_s9  ;;  %p1457_p3 = scmp.lt.u32.totalorder %s1448_s9, %s1753_s21 }
  0x8f   : > { %p1451_p0 = pnand %p1449_p12, %p2067_p13 }
  0x90   : > { %p1456_p11 = por %p1455_p8, %p1454_p6 }
  0x91   : > { %p1452_p9 = pneg %p1451_p0 }
  0x92   : > { %p1458_p7 = por %p1457_p3, %p1456_p11 }
  0x94   : > { %p1459_p10 = pnand %p1458_p7, %p1452_p9 }
  0x96   : > { %1462 = shalt.err (!%p1459_p10)
}
  0x97   : > { %s1463_s16 = scalar_lea.vmem %s430_s12, 128  ;;  %p2068_p2 = pmov %p2067_p13 }
  0x98   : > { %p1464_p1 = scmp.ne.s32.totalorder %s430_s12, %s1463_s16  ;;  %s1564_s20 = smov [#allocation10]  }
  0x99   : > { %s1468_s1 = sshll.u32 %s1564_s20, 4  ;;  %s1469_s1 = int_to_ptr.vmem [resolvable:$false] %s1468_s1 }
  0x9a   : > { %p1466_p4 = pnand %p1464_p1, %p2068_p2  ;;  %s1470_s26 = scalar_lea.vmem %s1469_s1, 256 }
  0x9b   : > { %p1471_p13 = scmp.lt.s32.totalorder %s430_s12, %s1469_s1  ;;  %p1472_p0 = scmp.lt.s32.totalorder %s1470_s26, %s1463_s16 }
  0x9c   : > { %p1467_p12 = pneg %p1466_p4 }
  0x9d   : > { %p1473_p6 = por %p1472_p0, %p1471_p13 }
  0x9f   : > { %p1474_p8 = pnand %p1473_p6, %p1467_p12 }
  0xa1   : > { %1477 = shalt.err (!%p1474_p8)
}
  0xa2   : > { %1275 = dma.hbm_to_vmem [thread:$0]  (!%p2066_p5), %s1753_s21, 128, %s430_s12, %s1755_s13  }
  0xa3   : > { %p2069_p9 = scmp.ne.s32.totalorder %s2052_s29, 0 }
  0xa4   : > { %s454_s18 = sand.u32 (!%p2069_p9), 1, %s1656_s25   ;;  %s456_s11 = sand.u32 (!%p2069_p9), 1, %s1548_s22  }
  0xa5   : > { %452 = sbr.rel (%p2069_p9) target bundleno = 1186 (0x4a2), region = 68  ;;  %s1852_s24 = sshll.u32 (!%p2069_p9), %s456_s11, 3 }
  0xa6   : > { %s455_s17 = scalar_lea.sflag (!%p2069_p9), [#allocation3], %s454_s18  ;;  %s458_s23 = scalar_lea.vmem (!%p2069_p9), [#allocation2], %s1852_s24 }
  0xa7   : > { %p2070_p11 = scmp.ne.s32.totalorder (!%p2069_p9), %s2049_s27, 0 }
  0xac   : > { %1523 = dma.done.wait (%p2070_p11), %s455_s17, 128  }
  0xad   : > { %1525 = vsyncadd (%p2070_p11), %s455_s17, 4294967168  ;;  %p2071_p5 = scmp.eq.s32.totalorder %s1656_s25, 0 }
  0xaf   : > { %1527 = dma.done.wait (%p2071_p5), [#allocation6], 896   ;;  %p2072_p3 = pmov %p2071_p5 }
  0xb1   : > { %1529 = vsyncadd (%p2072_p3), [#allocation6], 4294966400  ;;  %p2073_p7 = pmov %p2072_p3 }
  0xb2   : > { %p2074_p10 = pmov %p2072_p3 }
  0xb3   : > { %1531 = dma.done.wait (%p2073_p7), [#allocation9], 512  }
  0xb4   : > { %1533 = vsyncadd (%p2074_p10), [#allocation9], 4294966784  ;;  %s479_s29 = scalar_lea.vmem [#allocation10], %s1852_s24 }
  0xb5   : > { %1535 = dma.done.wait (%p2070_p11), %s455_s17, 128  }
  0xb6   : > { %1537 = vsyncadd (%p2070_p11), %s455_s17, 4294967168  ;;  %v1565_v0 = vmov 0.0|0.0   ;;  %vm1566_vm0 = vmmov 0   ;;  %v1567_v1 = vmov 0.0   ;;  %v632_v2 = vld [vmem:[#allocation7] sm:$0xff]  ;;  %v633_v3 = vld [vmem:[#allocation7 + $0x8] sm:$0xff] }
  0xb7   : > { %1229 = vmatprep.subr.bf16.mxu1 %v1565_v0  ;;  %1181 = vmatprep.mubr.msk.f32.mxu1 %vm1566_vm0, %v1567_v1  ;;  %v634_v4 = vld [vmem:[#allocation7 + $0x10] sm:$0xff]  ;;  %v1230_v5 = vpack.c.bf16 %v633_v3, %v632_v2  ;;  %v635_v6 = vld [vmem:[#allocation7 + $0x18] sm:$0xff]  ;;  %v544_v8 = vld [vmem:[%s2006_s2 + $0x8] sm:$0xff]  ;;  %vm554_vm1 = vcmask 261120   ;;  %p533_p1 = scmp.lt.s32.totalorder %s1656_s25, 2  ;;  %v1568_v18 = vmov 0  }
  0xb8   : > { %1223 = vmatprep.subr.bf16.mxu0 %v1565_v0  ;;  %1170 = vmatprep.mubr.msk.f32.mxu0 %vm1566_vm0, %v1567_v1  ;;  %v543_v7 = vld [vmem:[%s2006_s2] sm:$0xff]  ;;  %v1233_v9 = vpack.c.bf16 %v635_v6, %v634_v4  ;;  %v545_v11 = vld [vmem:[%s2006_s2 + $0x10] sm:$0xff]  ;;  %v546_v12 = vld [vmem:[%s2006_s2 + $0x18] sm:$0xff]  ;;  %s2075_s18 = sld [smem:[#allocation26_spill]]  ;;  %s2076_s27 = sld [smem:[#allocation28_spill]]  ;;  %vm881_vm3 = vcmask 195584  }
  0xb9   : > { %1231 = vmatpush3.bf16.msra.mxu1 %v1230_v5  ;;  %v1224_v10 = vpack.c.bf16 %v544_v8, %v543_v7  ;;  %v1227_v13 = vpack.c.bf16 %v546_v12, %v545_v11  ;;  %v629_v14 = vld [vmem:[#allocation5] sm:$0xff]  ;;  %v542_v15 = vld [vmem:[%s458_s23] sm:$0xff]  ;;  %v630_v16 = vld [vmem:[#allocation5 + $0x8] sm:$0xff]  ;;  %1329 = vset.pattern.permute.xlu0 %v1568_v18  ;;  %s1910_s28 = scalar_select %p533_p1, %s1656_s25, 2  ;;  %vm900_vm4 = vcmask 1043456  }
  0xba   : > { %1232 = vmatprep.subr.bf16.mxu1 %v1565_v0  ;;  %v631_v17 = vld [vmem:[#allocation5 + $0x10] sm:$0xff]  ;;  %v732_v38 = vld [vmem:[#allocation8] sm:$0xff]  ;;  %v733_v39 = vld [vmem:[#allocation8 + $0x8] sm:$0xff]  ;;  %s2077_s12 = sld [smem:[#allocation29_spill]]  ;;  %s2078_s7 = sld [smem:[#allocation27_spill]] }
  0xbb   : > { %1225 = vmatpush3.bf16.msra.mxu0 %v1224_v10  ;;  %s1119_s14 = sshll.u32 %s1910_s28, 3  ;;  %v1123_v22 = vld [vmem:[%s2009_s5] ss:$0 sm:$0xff]  ;;  %v734_v40 = vld [vmem:[#allocation8 + $0x10] sm:$0xff]  ;;  %v1236_v41 = vpack.c.bf16 %v733_v39, %v732_v38  ;;  %v836_v44 = vld [vmem:[%s479_s29] sm:$0xff]  ;;  %s2079_s9 = sld [smem:[#allocation23_spill]] }
  0xbc   : > { %1226 = vmatprep.subr.bf16.mxu0 %v1565_v0  ;;  %s540_s15 = scalar_lea.vmem %s2014_s10, %s1119_s14  ;;  %v735_v42 = vld [vmem:[#allocation8 + $0x18] sm:$0xff]  ;;  %s532_s28 = scalar_lea.vmem [#allocation11], %s1852_s24 }
  0xbd   : > { %1234 = vmatpush3.bf16.msra.mxu1 %v1233_v9  ;;  %v826_v19 = vld [vmem:[%s540_s15] sm:$0xff]  ;;  %v1239_v43 = vpack.c.bf16 %v735_v42, %v734_v40  ;;  %s1134_s0 = sshll.u32 %s1656_s25, 7  ;;  %s2080_s16 = sld [smem:[#allocation30_spill]] }
  0xbe   : > { %1207 = vmatprep.subr.bf16.mxu1 %v1567_v1  ;;  %829 = vperm.xlu0 %1329, %v826_v19   ;;  %v1121_v33 = vld [vmem:[%s2075_s18] ss:$0 sm:$0xff]  ;;  %s536_s19 = scalar_lea.vmem %s2076_s27, %s1119_s14  ;;  %s959_s14 = sshll.u32 %s532_s28, 4  ;;  %s1957_s14 = int_to_ptr.vmem [resolvable:$true] %s959_s14 }
  0xbf   : > { %1228 = vmatpush3.bf16.msra.mxu0 %v1227_v13  ;;  %v837_v45 = vld [vmem:[%s536_s19] sm:$0xff]  ;;  %s946_s1 = scalar_lea.sflag [#allocation4], %s456_s11  ;;  %s1478_s26 = scalar_lea.vmem %s1957_s14, 128 }
  0xc0   : > { %1182 = vmatmul.mubr.msk.f32.vlgmr.msra.gmra.mrb[0].mxu1 %vm554_vm1, %v629_v14  ;;  %1235 = vmatprep.subr.bf16.mxu0 %v1565_v0  ;;  %v838_v46 = vadd.f32 %v837_v45, %v836_v44  ;;  %v1131_v47 = vld [vmem:[%s2077_s12] ss:$0 sm:$0xff]  ;;  %p1479_p2 = scmp.ne.s32.totalorder %s1957_s14, %s1478_s26  ;;  %s1569_s25 = smov [#allocation11]  }
  0xc1   : > { %1184 = vmatprep.mubr.msk.f32.mxu1 %vm1566_vm0, %v1567_v1  ;;  %v1127_v57 = vld [vmem:[%s2078_s7] ss:$0 sm:$0xff]  ;;  %p2081_p4 = scmp.ne.s32.totalorder %s2079_s9, 0  ;;  %s1482_s24 = sshll.u32 %s1569_s25, 4  ;;  %s1483_s24 = int_to_ptr.vmem [resolvable:$false] %s1482_s24 }
  0xc2   : > { %1171 = vmatmul.mubr.msk.f32.vlgmr.msra.gmra.mrb[0].mxu0 %vm554_vm1, %v542_v15  ;;  %v879_v49 = vmul.f32 -1000000.0, %v838_v46  ;;  %s1484_s18 = scalar_lea.vmem %s1483_s24, 256  ;;  %p1485_p0 = scmp.lt.s32.totalorder %s1957_s14, %s1483_s24 }
  0xc3   : > { %1198 = vmatprep.mubr.msk.f32.mxu0 %vm1566_vm0, %v1567_v1  ;;  %1237 = vmatpush3.bf16.msra.mxu0 %v1236_v41  ;;  %s1962_s20 = scalar_lea.hbm %s2080_s16, %s1134_s0  ;;  %p1480_p12 = pnand %p1479_p2, %p2081_p4 }
  0xc4   : > { %1185 = vmatmul.mubr.msk.f32.gmra.mrb[2].mxu1 %vm554_vm1, %v630_v16  ;;  %1238 = vmatprep.subr.bf16.mxu0 %v1565_v0  ;;  %p1486_p6 = scmp.lt.s32.totalorder %s1484_s18, %s1478_s26 }
  0xc5   : > { %1187 = vmatprep.mubr.msk.f32.mxu1 %vm1566_vm0, %v1567_v1  ;;  %p1481_p13 = pneg %p1480_p12 }
  0xc6   : > { %p1487_p8 = por %p1486_p6, %p1485_p0 }
  0xc7   : > { %1240 = vmatpush3.bf16.msra.mxu0 %v1239_v43 }
  0xc8   : > { %1188 = vmatmul.mubr.msk.f32.gmra.mrb[4].mxu1 %vm554_vm1, %v631_v17  ;;  %1215 = vmatprep.subr.bf16.mxu0 %v1567_v1  ;;  %p1488_p9 = pnand %p1487_p8, %p1481_p13 }
  0xc9   : > { %1211 = vmatprep.mubr.msk.bf16.mxu1 %vm1566_vm0, %v1567_v1 }
  0xca   : > { %1199 = vmatmul.mubr.msk.f32.vlgmr.msra.gmra.mrb[2].mxu0 %vm554_vm1, %v629_v14 }
  0xcb   : > { %1201 = vmatprep.mubr.msk.f32.mxu0 %vm1566_vm0, %v1567_v1 }
  0xce   : > { %1202 = vmatmul.mubr.msk.f32.gmra.mrb[4].mxu0 %vm554_vm1, %v630_v16 }
  0xcf   : > { %1204 = vmatprep.mubr.msk.f32.mxu0 %vm1566_vm0, %v1567_v1 }
  0xd2   : > { %1205 = vmatmul.mubr.msk.f32.gmra.mrb[6].mxu0 %vm554_vm1, %v631_v17 }
  0xd3   : > { %1219 = vmatprep.mubr.msk.bf16.mxu0 %vm1566_vm0, %v1567_v1 }
 0x13d   : > { %v830_v48 = vpop.permute.xlu0 %829 }
 0x13e   : > { %vm835_vm2 = vcmp.eq.s32.totalorder %v830_v48, %v1131_v47 }
 0x193   : > { %v718_v20 = vpop.f32.mrb[0].mxu1 }
 0x194   : > { %v1183_v21 = vpop.f32.mrb[1].mxu1  ;;  %v719_v26 = vadd.f32 %v1123_v22, %v718_v20 }
 0x195   : > { %v624_v23 = vpop.f32.mrb[0].mxu0 }
 0x196   : > { %v1172_v24 = vpop.f32.mrb[1].mxu0  ;;  %v625_v34 = vadd.f32 %v1121_v33, %v624_v23 }
 0x197   : > { %v723_v25 = vpop.f32.mrb[2].mxu1 }
 0x198   : > { %v724_v27 = vadd.f32 %v1123_v22, %v723_v25  ;;  %v1186_v28 = vpop.f32.mrb[3].mxu1  ;;  %v628_v36 = vmul.f32 0.25, %v625_v34 }
 0x19a   : > { %v824_v29 = vpack.c.bf16 %v724_v27, %v719_v26  ;;  %v823_v37 = vpack.c.bf16 %v628_v36, %v628_v36 }
 0x19b   : > { %v728_v30 = vpop.f32.mrb[4].mxu1 }
 0x19c   : > { %1208 = vmatpush3.bf16.xpose.msra.mxu1 %v824_v29  ;;  %v729_v31 = vadd.f32 %v1123_v22, %v728_v30  ;;  %v1189_v32 = vpop.f32.mrb[5].mxu1 }
 0x19d   : > { %1209 = vmatprep.subr.bf16.mxu1 %v1567_v1  ;;  %v809_v58 = vpop.f32.mrb[2].mxu0 }
 0x19e   : > { %v825_v35 = vpack.c.bf16 %v729_v31, %v729_v31  ;;  %v1200_v59 = vpop.f32.mrb[3].mxu0  ;;  %v810_v60 = vadd.f32 %v1127_v57, %v809_v58 }
 0x1a1   : > { %v814_v61 = vpop.f32.mrb[4].mxu0 }
 0x1a2   : > { %v815_v62 = vadd.f32 %v1127_v57, %v814_v61  ;;  %v1203_v63 = vpop.f32.mrb[5].mxu0 }
 0x1a4   : > { %1210 = vmatpush3.bf16.xpose.msra.mxu1 %v825_v35  ;;  %v895_v0 = vpack.c.bf16 %v815_v62, %v810_v60 }
 0x1a5   : > { %v819_v7 = vpop.f32.mrb[6].mxu0 }
 0x1a6   : > { %1216 = vmatpush3.bf16.msra.mxu0 %v895_v0  ;;  %v1206_v8 = vpop.f32.mrb[7].mxu0  ;;  %v820_v9 = vadd.f32 %v1127_v57, %v819_v7 }
 0x1a7   : > { %1217 = vmatprep.subr.bf16.mxu0 %v1567_v1 }
 0x1a8   : > { %v896_v10 = vpack.c.bf16 %v820_v9, %v820_v9 }
 0x1aa   : > { %v902_v11 = vsel %vm900_vm4, %v896_v10, 0 }
 0x1ab   : > { %1212 = vmatmul.mubr.bf16.vlgmr.msra.gmra.mrb[8].mxu1 %v823_v37  ;;  %1218 = vmatpush3.bf16.msra.mxu0 %v902_v11 }
 0x27e   : > { %v873_v50 = vpop.f32.mrb[8].mxu1 }
 0x27f   : > { %v874_v51 = vadd.f32 %v873_v50, %v838_v46  ;;  %v1213_v52 = vpop.f32.mrb[9].mxu1 }
 0x280   : > { %v876_v53 = vpop.f32.mrb[10].mxu1 }
 0x281   : > { %v1214_v54 = vpop.f32.mrb[11].mxu1  ;;  %v880_v55 = vsel %vm835_vm2, %v874_v51, %v879_v49 }
 0x282   : > { %v882_v56 = vsel %vm881_vm3, %v880_v55, -inf }
 0x283   : > { %883 = vmax.xlane.f32.xlu0 %v882_v56 }
 0x310   : > { %v884_v2 = vpop.xlane.xlu0 %883 }
 0x311   : > { %v885_v3 = vsub.f32 %v880_v55, %v884_v2 }
 0x313   : > { %v886_v4 = vmul.f32 1.442695, %v885_v3 }
 0x315   : > { %1330 = vpow2.f32 %v886_v4 }
 0x31f   : > { %v1331_v5 = vpop.eup %1330 }
 0x320   : > { %v888_v6 = vsel %vm881_vm3, %v1331_v5, 0.0 }
 0x321   : > { %889 = vadd.xlane.f32.xlu1 %v888_v6 }
 0x3ae   : > { %v890_v12 = vpop.xlane.xlu1 %889 }
 0x3af   : > { %1332 = vrcp.f32 %v890_v12 }
 0x3b9   : > { %v1333_v1 = vpop.eup %1332 }
 0x3ba   : > { %v892_v13 = vmul.f32 %v1333_v1, %v1331_v5 }
 0x3bc   : > { %v893_v14 = vsel %vm835_vm2, %v892_v13, 0.0 }
 0x3bd   : > { %v894_v15 = vpack.c.bf16 %v893_v14, %v893_v14 }
 0x3bf   : > { %1220 = vmatmul.mubr.msk.bf16.vlgmr.msra.gmra.mrb[8].mxu0 %vm881_vm3, %v894_v15 }
 0x492   : > { %v938_v16 = vpop.f32.mrb[8].mxu0 }
 0x493   : > { %944 = vst [vmem:[%s532_s28] sm:$0xff] %v938_v16  ;;  %v1221_v17 = vpop.f32.mrb[9].mxu0 }
 0x494   : > { %v941_v18 = vpop.f32.mrb[10].mxu0 }
 0x495   : > { %1491 = shalt.err (!%p1488_p9)
}
 0x496   : > { %s1492_s11 = scalar_lea.hbm %s1962_s20, 128  ;;  %s1496_s27 = scalar_lea.hbm %s2080_s16, 384 }
 0x497   : > { %p1493_p11 = scmp.ne.s32.totalorder %s1962_s20, %s1492_s11  ;;  %p1497_p7 = scmp.lt.u32.totalorder %s1962_s20, %s2080_s16 }
 0x498   : > { %p1498_p10 = scmp.lt.u32.totalorder %s1496_s27, %s1492_s11  ;;  %p1500_p2 = scmp.lt.u32.totalorder %s1492_s11, %s1962_s20 }
 0x499   : > { %p1494_p5 = pnand %p1493_p11, %p2081_p4 }
 0x49a   : > { %p1499_p1 = por %p1498_p10, %p1497_p7 }
 0x49b   : > { %p1495_p3 = pneg %p1494_p5 }
 0x49c   : > { %p1501_p12 = por %p1500_p2, %p1499_p1 }
 0x49e   : > { %p1502_p13 = pnand %p1501_p12, %p1495_p3 }
 0x4a0   : > { %1505 = shalt.err (!%p1502_p13)
}
 0x4a1   : > { %1257 = dma.vmem_to_hbm [thread:$0]  (%p2081_p4), %s1957_s14, 128, %s1962_s20, %s946_s1   ;;  %v1222_v19 = vpop.f32.mrb[11].mxu0 }
 0x4a2 PF: > { %s2082_s13 = sld [smem:[#allocation19_spill]]  ;;  %s2083_s12 = sld [smem:[#allocation17_spill]] }
 0x4a3   : > { %s2084_s29 = sld [smem:[#allocation20_spill]] }
 0x4a8   : > { %p1287_p0 = scmp.ge.s32.totalorder %s2082_s13, 2  ;;  %s971_s3 = sand.u32 1, %s2083_s12  }
 0x4a9   : > { %p2085_p6 = scmp.ne.s32.totalorder %s2084_s29, 0  ;;  %s972_s7 = scalar_lea.sflag [#allocation4], %s971_s3 }
 0x4ab   : > { %p1277_p8 = pnand %p1287_p0, %p2085_p6 }
 0x4ad   : > { %1539 = dma.done.wait (!%p1277_p8), %s972_s7, 128  }
 0x4ae   : > { %1541 = vsyncadd (!%p1277_p8), %s972_s7, 4294967168  ;;  %s2086_s24 = sld [smem:[#allocation21_spill]]  ;;  %s2087_s28 = sld [smem:[#allocation18_spill]] }
 0x4af   : > { %s2088_s23 = sld [smem:[#allocation22_spill]]  ;;  %s2089_s21 = smov %s1548_s22 }
 0x4b4   : > { %p27_p9 = scmp.ge.s32.totalorder %s2086_s24, 5   ;;  %s2090_s22 = smov %s2087_s28 }
 0x4b6   :  { %29 = sbr.rel (!%p27_p9) target bundleno = 15 (0xf), region = 142 }
 0x4bd   :  { %977 = vsyncpa [#allocation3], 1 }
 0x4be   :  { %979 = vsyncpa [#allocation3 + $0x1], 1 }
 0x4bf   :  { %980 = vsyncpa [#allocation6], 1 }
 0x4c0   :  { %981 = vsyncpa [#allocation9], 1 }
 0x4c1   :  { %982 = vsyncpa [#allocation4], 1 }
 0x4c2   :  { %984 = vsyncpa [#allocation4 + $0x1], 1 }

</bundles_post_ra>
